<compile_context>
chip_gen: v5e
topology: v5e:2x2
jax: 0.10.0
libtpu: 0.0.40
codegen_flags: <defaults>
</compile_context>

<pallas_src>
import jax
import jax.numpy as jnp
from jax.experimental import pallas as pl
from jax.experimental.pallas import tpu as pltpu

LANE = 128


def _l1_partial_kernel(p_ref, t_ref, o_ref, acc_ref):
    """Accumulate |p - t| elementwise into a block-shaped f32 scratch; reduce
    to an (1, 8, 128) partial-sum block only on the last inner grid step."""
    i = pl.program_id(1)

    @pl.when(i == 0)
    def _():
        acc_ref[...] = jnp.zeros_like(acc_ref)

    # Cast inside the kernel (free on the VPU) -- inputs stay in their original
    # dtype in HBM, halving DMA bytes for bf16/fp8 inputs.
    diff = p_ref[...].astype(jnp.float32) - t_ref[...].astype(jnp.float32)
    acc_ref[...] += jnp.abs(diff)

    @pl.when(i == pl.num_programs(1) - 1)
    def _():
        rb = acc_ref.shape[0]
        # Fold the block down to a single (8, 128) vreg-shaped partial sum.
        o_ref[...] = acc_ref[...].reshape(rb // 8, 8, LANE).sum(
            axis=0, keepdims=True
        )


def l1_loss(pred, target, *, row_block=2048, n_par=2):
    """mean(|pred - target|); bulk of the reduction runs in a Pallas kernel."""
    assert pred.shape == target.shape
    total = pred.size
    flat_p = pred.reshape(-1)
    flat_t = target.reshape(-1)

    rows_full = total // LANE          # full lane-width rows available
    rem = total - rows_full * LANE     # sub-lane remainder (elements)

    # Adapt the tile to the problem size: multiple of 8 sublanes, <= row_block.
    rb = (min(row_block, rows_full) // 8) * 8
    if rb >= 8:
        n_blocks = rows_full // rb
        npar = max(1, min(n_par, n_blocks))
        n_steps = n_blocks // npar
        main_rows = npar * n_steps * rb
    else:
        npar = n_steps = main_rows = 0

    main_elems = main_rows * LANE

    # Tail (anything not covered by whole kernel blocks) -> tiny plain-JAX sum.
    tail_sum = None
    if main_elems < total:
        tp = flat_p[main_elems:].astype(jnp.float32)
        tt = flat_t[main_elems:].astype(jnp.float32)
        tail_sum = jnp.sum(jnp.abs(tp - tt))

    if main_rows == 0:
        # Input too small for even one (8, 128) block; pure-JAX fallback.
        return tail_sum / total

    if rem == 0:
        # Free reshape of the contiguous flat array -- no HBM copy, no pad.
        p2 = flat_p.reshape(rows_full, LANE)
        t2 = flat_t.reshape(rows_full, LANE)
    else:
        # Rare case (total not a multiple of 128): slice the lane-aligned
        # prefix for the kernel; the remainder was already handled as tail.
        p2 = flat_p[:main_elems].reshape(main_rows, LANE)
        t2 = flat_t[:main_elems].reshape(main_rows, LANE)

    partials = pl.pallas_call(
        _l1_partial_kernel,
        out_shape=jax.ShapeDtypeStruct((npar, 8, LANE), jnp.float32),
        grid_spec=pltpu.PrefetchScalarGridSpec(
            num_scalar_prefetch=0,
            grid=(npar, n_steps),
            in_specs=[
                pl.BlockSpec((rb, LANE), lambda p, i: (p * n_steps + i, 0)),
                pl.BlockSpec((rb, LANE), lambda p, i: (p * n_steps + i, 0)),
            ],
            out_specs=pl.BlockSpec((1, 8, LANE), lambda p, i: (p, 0, 0)),
            scratch_shapes=[pltpu.VMEM((rb, LANE), jnp.float32)],
        ),
        compiler_params=pltpu.CompilerParams(
            dimension_semantics=("parallel", "arbitrary"),
        ),
    )(p2, t2)

    total_sum = jnp.sum(partials)
    if tail_sum is not None:
        total_sum = total_sum + tail_sum
    return total_sum / total


if __name__ == "__main__":
    key = jax.random.PRNGKey(0)
    kp, kt = jax.random.split(key)
    # NCHW-style shapes consistent with an image loss: batch=2, ch=4, 16x16
    pred = jax.random.normal(kp, (2, 4, 16, 16), dtype=jnp.float32)
    target = jax.random.normal(kt, (2, 4, 16, 16), dtype=jnp.float32)

    loss = l1_loss(pred, target)
    jax.block_until_ready(loss)

    # sanity check against pure-JAX reference (same semantics as nn.L1Loss)
    ref = jnp.mean(jnp.abs(pred - target))
    assert jnp.allclose(loss, ref, rtol=1e-5, atol=1e-6), (loss, ref)

    print("KERNEL_OK")
</pallas_src>

<mosaic_0001>
module attributes {stable_mosaic.version = 11 : i64} {
  func.func @_l1_partial_kernel(%arg0: i32, %arg1: i32, %arg2: memref<16x128xf32, #tpu.memory_space<vmem>>, %arg3: memref<16x128xf32, #tpu.memory_space<vmem>>, %arg4: memref<1x8x128xf32, #tpu.memory_space<vmem>>, %arg5: memref<16x128xf32, #tpu.memory_space<vmem>>) attributes {dimension_semantics = [#tpu.dimension_semantics<parallel>, #tpu.dimension_semantics<arbitrary>], iteration_bounds = array<i64: 1, 1>, scalar_prefetch = 0 : i64, scratch_operands = 1 : i64, tpu.core_type = #tpu.core_type<tc>, window_params = [{transform_indices = @transform_0, window_bounds = array<i64: 16, 128>}, {transform_indices = @transform_1, window_bounds = array<i64: 16, 128>}, {transform_indices = @transform_2, window_bounds = array<i64: 1, 8, 128>}]} {
    %c0_i32 = arith.constant 0 : i32
    %0 = arith.cmpi eq, %arg1, %c0_i32 : i32
    %1 = arith.extui %0 : i1 to i32
    %c0_i32_0 = arith.constant 0 : i32
    %2 = arith.cmpi ne, %1, %c0_i32_0 : i32
    scf.if %2 {
      %cst = arith.constant 0.000000e+00 : f32
      %13 = vector.broadcast %cst : f32 to vector<16x128xf32>
      %c0_10 = arith.constant 0 : index
      %c0_11 = arith.constant 0 : index
      %14 = vector.load %arg5[%c0_10, %c0_11] : memref<16x128xf32, #tpu.memory_space<vmem>>, vector<16x128xf32>
      tpu.vector_store %arg5[%c0_10, %c0_11], %13 {strides = array<i32>} : memref<16x128xf32, #tpu.memory_space<vmem>>, vector<16x128xf32>,
    } else {
    }
    %c0 = arith.constant 0 : index
    %c0_1 = arith.constant 0 : index
    %3 = vector.load %arg2[%c0, %c0_1] : memref<16x128xf32, #tpu.memory_space<vmem>>, vector<16x128xf32>
    %c0_2 = arith.constant 0 : index
    %c0_3 = arith.constant 0 : index
    %4 = vector.load %arg3[%c0_2, %c0_3] : memref<16x128xf32, #tpu.memory_space<vmem>>, vector<16x128xf32>
    %5 = arith.subf %3, %4 : vector<16x128xf32>
    %c0_4 = arith.constant 0 : index
    %c0_5 = arith.constant 0 : index
    %6 = vector.load %arg5[%c0_4, %c0_5] : memref<16x128xf32, #tpu.memory_space<vmem>>, vector<16x128xf32>
    %7 = math.absf %5 : vector<16x128xf32>
    %8 = arith.addf %6, %7 : vector<16x128xf32>
    %c0_6 = arith.constant 0 : index
    %c0_7 = arith.constant 0 : index
    %9 = vector.load %arg5[%c0_6, %c0_7] : memref<16x128xf32, #tpu.memory_space<vmem>>, vector<16x128xf32>
    tpu.vector_store %arg5[%c0_6, %c0_7], %8 {strides = array<i32>} : memref<16x128xf32, #tpu.memory_space<vmem>>, vector<16x128xf32>,
    %c0_i32_8 = arith.constant 0 : i32
    %10 = arith.cmpi eq, %arg1, %c0_i32_8 : i32
    %11 = arith.extui %10 : i1 to i32
    %c0_i32_9 = arith.constant 0 : i32
    %12 = arith.cmpi ne, %11, %c0_i32_9 : i32
    scf.if %12 {
      %c0_10 = arith.constant 0 : index
      %c0_11 = arith.constant 0 : index
      %13 = vector.load %arg5[%c0_10, %c0_11] : memref<16x128xf32, #tpu.memory_space<vmem>>, vector<16x128xf32>
      %14 = vector.shape_cast %13 : vector<16x128xf32> to vector<2x8x128xf32>
      %cst = arith.constant dense<0.000000e+00> : vector<8x128xf32>
      %15 = vector.multi_reduction <add>, %14, %cst [0] : vector<2x8x128xf32> to vector<8x128xf32>
      %16 = vector.shape_cast %15 : vector<8x128xf32> to vector<1x8x128xf32>
      %c0_12 = arith.constant 0 : index
      %c0_13 = arith.constant 0 : index
      %c0_14 = arith.constant 0 : index
      %17 = vector.load %arg4[%c0_12, %c0_13, %c0_14] : memref<1x8x128xf32, #tpu.memory_space<vmem>>, vector<1x8x128xf32>
      tpu.vector_store %arg4[%c0_12, %c0_13, %c0_14], %16 {strides = array<i32>} : memref<1x8x128xf32, #tpu.memory_space<vmem>>, vector<1x8x128xf32>,
    } else {
    }
    return
  }
  func.func @transform_0(%arg0: i32, %arg1: i32) -> (i32, i32) {
    %c1_i32 = arith.constant 1 : i32
    %0 = arith.muli %arg0, %c1_i32 : i32
    %1 = arith.addi %0, %arg1 : i32
    %c0_i32 = arith.constant 0 : i32
    %c0_i32_0 = arith.constant 0 : i32
    return %1, %c0_i32 : i32, i32
  }
  func.func @transform_1(%arg0: i32, %arg1: i32) -> (i32, i32) {
    %c1_i32 = arith.constant 1 : i32
    %0 = arith.muli %arg0, %c1_i32 : i32
    %1 = arith.addi %0, %arg1 : i32
    %c0_i32 = arith.constant 0 : i32
    %c0_i32_0 = arith.constant 0 : i32
    return %1, %c0_i32 : i32, i32
  }
  func.func @transform_2(%arg0: i32, %arg1: i32) -> (i32, i32, i32) {
    %c0_i32 = arith.constant 0 : i32
    %c0_i32_0 = arith.constant 0 : i32
    %c0_i32_1 = arith.constant 0 : i32
    return %arg0, %c0_i32, %c0_i32_0 : i32, i32, i32
  }
}

</mosaic_0001>

<bundles_post_ra>
// kernel: tpu_custom_call.1
= control target key start
LH: loop header
LB: loop body
LE: loop exit
PB: predicated region body
PF: predicated region fallthrough
CT: control target
= control target key end

     0   :  { %7 = vsyncpa [#allocation4], 0  ;;  %s213_s0 = inlined_call_operand.hbm [shape: f32[16,128], index: 0, kind: input, shape index: {}]   ;;  %s214_s1 = inlined_call_operand.hbm [shape: f32[16,128], index: 1, kind: input, shape index: {}]   ;;  %s215_s2 = inlined_call_operand.hbm [shape: f32[1,8,128], index: 2, kind: output, shape index: {}]  }
   0x1   :  { %8 = vsyncpa [#allocation7], 0 }
   0x2   :  { %9 = vsyncpa [#allocation5], 0  ;;  %s18_s11 = sshll.u32 %s213_s0, 4  ;;  %s184_s12 = smov [#allocation3]   ;;  %s19_s11 = int_to_ptr.hbm [resolvable:$true] %s18_s11 }
   0x3   :  { %s20_s13 = sshll.u32 %s184_s12, 4  ;;  %s35_s16 = sshll.u32 %s214_s1, 4  ;;  %s21_s13 = int_to_ptr.vmem [resolvable:$true] %s20_s13  ;;  %s36_s16 = int_to_ptr.hbm [resolvable:$true] %s35_s16 }
   0x4   :  { %s185_s17 = smov 128   ;;  %s186_s18 = smov 8  }
   0x5   :  { %26 = dma.hbm_to_vmem [thread:$0]  %s19_s11, 256, %s21_s13, [#allocation4], %s185_s17, %s185_s17, %s186_s18  }
   0x6   :  { %s187_s19 = smov [#allocation6]  }
   0x7   :  { %s37_s20 = sshll.u32 %s187_s19, 4  ;;  %s38_s20 = int_to_ptr.vmem [resolvable:$true] %s37_s20 }
   0x8   :  { %43 = dma.hbm_to_vmem [thread:$0]  %s36_s16, 256, %s38_s20, [#allocation7], %s185_s17, %s185_s17, %s186_s18  }
   0x9   :  { %178 = dma.done.wait [#allocation4], 256  }
   0xa   :  { %179 = vsyncadd [#allocation4], 4294967040 }
   0xb   :  { %180 = dma.done.wait [#allocation7], 256  }
   0xc   :  { %181 = vsyncadd [#allocation7], 4294967040  ;;  %v62_v0 = vld [vmem:[#allocation3] sm:$0xff]  ;;  %v63_v1 = vld [vmem:[#allocation3 + $0x8] sm:$0xff]  ;;  %s188_s0 = smov [#allocation8]   ;;  %s90_s23 = sshll.u32 %s215_s2, 4  ;;  %s91_s23 = int_to_ptr.hbm [resolvable:$true] %s90_s23 }
   0xd   :  { %v64_v2 = vld [vmem:[#allocation6] sm:$0xff]  ;;  %v65_v3 = vld [vmem:[#allocation6 + $0x8] sm:$0xff]  ;;  %s88_s1 = sshll.u32 %s188_s0, 4  ;;  %s89_s1 = int_to_ptr.vmem [resolvable:$true] %s88_s1 }
   0xe   :  { %v66_v4 = vsub.f32 %v62_v0, %v64_v2  ;;  %v67_v5 = vsub.f32 %v63_v1, %v65_v3 }
  0x10   :  { %v70_v6 = vand.u32 2147483647, %v66_v4  ;;  %v71_v7 = vand.u32 2147483647, %v67_v5 }
  0x12   :  { %v81_v8 = vadd.f32 %v71_v7, %v70_v6 }
  0x14   :  { %82 = vst [vmem:[#allocation8] sm:$0xff] %v81_v8 }
  0x15   :  { %93 = dma.vmem_to_hbm [thread:$0]  %s89_s1, 128, %s91_s23, [#allocation5]  }
  0x16   :  { %182 = dma.done.wait [#allocation5], 128  }
  0x17   :  { %183 = vsyncadd [#allocation5], 4294967168 }
  0x18   :  { %98 = vsyncpa [#allocation4], 1 }
  0x19   :  { %99 = vsyncpa [#allocation7], 1 }
  0x1a   :  { %100 = vsyncpa [#allocation5], 1 }

</bundles_post_ra>
